<compile_context>
chip_gen: v5e
topology: v5e:2x2
jax: 0.10.0
libtpu: 0.0.40
codegen_flags: <defaults>
</compile_context>

<pallas_src>
import jax
import jax.numpy as jnp
from jax.experimental import pallas as pl
from jax.experimental.pallas import tpu as pltpu

LANES = 128
_VMEM_LIMIT_BYTES = 32 << 20   # explicit scoped-VMEM limit; safe on v5e/v6e/v7x physical VMEM
_DB_BUDGET_BYTES = 24 << 20    # budget for double-buffered in+out tiles (8 MiB headroom)
_MIN_PALLAS_ELEMS = 64 * 1024  # below this, plain fused XLA beats the kernel launch cost


def _round_up(v: int, m: int) -> int:
    return ((v + m - 1) // m) * m


def _packed_sublanes(dtype) -> int:
    # Rows per native sublane tile: 8 for 32-bit, 16 for bf16/f16, 32 for int8/fp8.
    return 8 * max(1, 4 // jnp.dtype(dtype).itemsize)


def _scale_kernel(scale_ref, x_ref, o_ref):
    s = scale_ref[0]  # scalar from SMEM, read once per grid step
    o_ref[...] = x_ref[...].astype(o_ref.dtype) * s


def _scale_bulk(x2d: jax.Array, scale1: jax.Array, out_dtype, row_tile: int) -> jax.Array:
    """Run the streaming kernel on a (rows, 128) lane-dense slab."""
    rows, lanes = x2d.shape
    num_tiles = pl.cdiv(rows, row_tile)  # ragged last block handled by Pallas masking
    in_b = jnp.dtype(x2d.dtype).itemsize
    out_b = jnp.dtype(out_dtype).itemsize
    return pl.pallas_call(
        _scale_kernel,
        out_shape=jax.ShapeDtypeStruct((rows, lanes), out_dtype),
        grid_spec=pltpu.PrefetchScalarGridSpec(
            num_scalar_prefetch=0,
            grid=(num_tiles,),
            in_specs=[
                pl.BlockSpec(memory_space=pltpu.SMEM),              # scale (1,) in SMEM
                pl.BlockSpec((row_tile, lanes), lambda i: (i, 0)),  # x tile
            ],
            out_specs=pl.BlockSpec((row_tile, lanes), lambda i: (i, 0)),
        ),
        compiler_params=pltpu.CompilerParams(
            # Shards the streaming loop across the 2 TensorCores on v7x.
            dimension_semantics=("parallel",),
            vmem_limit_bytes=_VMEM_LIMIT_BYTES,
        ),
        cost_estimate=pl.CostEstimate(
            flops=rows * lanes,
            transcendentals=0,
            bytes_accessed=rows * lanes * (in_b + out_b),
        ),
    )(scale1, x2d)


def scale_layer(x: jax.Array, scale: jax.Array, *,
                min_pallas_elems: int = _MIN_PALLAS_ELEMS) -> jax.Array:
    """Elementwise y = x * scale (scale is a length-1 parameter, like nn.Parameter)."""
    x = jnp.asarray(x)
    scale = jnp.asarray(scale)
    out_dtype = jnp.promote_types(x.dtype, scale.dtype)  # PyTorch promotion semantics
    scale1 = scale.reshape(-1)[:1].astype(out_dtype)     # robust to () or (1,) scale

    orig_shape = x.shape
    n = x.size

    # Empty / tiny inputs: launch + pipeline prologue dominates -> plain XLA.
    if n == 0 or n < min_pallas_elems:
        return (x.astype(out_dtype) * scale1[0]).reshape(orig_shape)

    in_b = jnp.dtype(x.dtype).itemsize
    out_b = jnp.dtype(out_dtype).itemsize
    packed = max(_packed_sublanes(x.dtype), _packed_sublanes(out_dtype))
    chunk = packed * LANES                 # dtype-aware alignment unit
    rem = n % chunk
    bulk = n - rem

    flat = x.reshape(-1)
    if bulk == 0:                          # whole tensor is smaller than one aligned chunk
        return (x.astype(out_dtype) * scale1[0]).reshape(orig_shape)

    rows = bulk // LANES                   # multiple of `packed` by construction

    # Tile sizing: as large as the VMEM budget allows (double-buffered in+out),
    # but small enough to give the v7x megacore >= ~4 grid steps on mid-size tensors.
    per_row_bytes = LANES * (in_b + out_b)
    max_rows = (_DB_BUDGET_BYTES // 2) // per_row_bytes
    max_rows = max(packed, (max_rows // packed) * packed)
    want = _round_up(pl.cdiv(rows, 4), packed)
    row_tile = max(packed, min(max_rows, want))

    bulk2d = flat[:bulk].reshape(rows, LANES)
    out_bulk = _scale_bulk(bulk2d, scale1, out_dtype, row_tile).reshape(-1)

    if rem == 0:
        return out_bulk.reshape(orig_shape)

    # Ragged tail (< packed*128 elements): plain XLA multiply, no full-tensor pad/slice.
    tail = flat[bulk:].astype(out_dtype) * scale1[0]
    return jnp.concatenate([out_bulk, tail]).reshape(orig_shape)


if __name__ == "__main__":
    key = jax.random.PRNGKey(0)

    # Deterministic parameter init, matching nn.Parameter(torch.FloatTensor([0.1])).
    init_value = 0.1
    scale_param = jnp.array([init_value], dtype=jnp.float32)

    # NCHW input, small shape (2048 elements, fully aligned -> pure kernel path).
    x = jax.random.normal(key, (2, 4, 16, 16), dtype=jnp.float32)
    y = scale_layer(x, scale_param, min_pallas_elems=0)   # force the Pallas path for the demo
    y = jax.block_until_ready(y)
    ref = x * scale_param[0]
    assert y.shape == x.shape and y.dtype == ref.dtype
    assert jnp.allclose(y, ref, atol=1e-6, rtol=1e-6)

    # Ragged shape (2*4*17*17 = 2312 elements) -> aligned bulk through the kernel + XLA tail.
    x2 = jax.random.normal(jax.random.PRNGKey(0), (2, 4, 17, 17), dtype=jnp.float32)
    y2 = jax.block_until_ready(scale_layer(x2, scale_param, min_pallas_elems=0))
    assert y2.shape == x2.shape
    assert jnp.allclose(y2, x2 * scale_param[0], atol=1e-6, rtol=1e-6)

    print("KERNEL_OK")
</pallas_src>

<mosaic_0001>
module attributes {stable_mosaic.version = 11 : i64} {
  func.func @_scale_kernel(%arg0: i32, %arg1: memref<1xf32, #tpu.memory_space<smem>>, %arg2: memref<8x128xf32, #tpu.memory_space<vmem>>, %arg3: memref<8x128xf32, #tpu.memory_space<vmem>>) attributes {dimension_semantics = [#tpu.dimension_semantics<parallel>], iteration_bounds = array<i64: 2>, scalar_prefetch = 0 : i64, scratch_operands = 0 : i64, tpu.core_type = #tpu.core_type<tc>, window_params = [{transform_indices = @transform_0, window_bounds = array<i64: 1>}, {transform_indices = @transform_1, window_bounds = array<i64: 8, 128>}, {transform_indices = @transform_2, window_bounds = array<i64: 8, 128>}]} {
    %c0 = arith.constant 0 : index
    %0 = memref.load %arg1[%c0] : memref<1xf32, #tpu.memory_space<smem>>
    %c0_0 = arith.constant 0 : index
    %c0_1 = arith.constant 0 : index
    %1 = vector.load %arg2[%c0_0, %c0_1] : memref<8x128xf32, #tpu.memory_space<vmem>>, vector<8x128xf32>
    %2 = vector.broadcast %0 : f32 to vector<8x128xf32>
    %3 = arith.mulf %1, %2 : vector<8x128xf32>
    %c0_2 = arith.constant 0 : index
    %c0_3 = arith.constant 0 : index
    %4 = vector.load %arg3[%c0_2, %c0_3] : memref<8x128xf32, #tpu.memory_space<vmem>>, vector<8x128xf32>
    tpu.vector_store %arg3[%c0_2, %c0_3], %3 {strides = array<i32>} : memref<8x128xf32, #tpu.memory_space<vmem>>, vector<8x128xf32>,
    return
  }
  func.func @transform_0(%arg0: i32) -> i32 {
    %c0_i32 = arith.constant 0 : i32
    %c0_i32_0 = arith.constant 0 : i32
    return %c0_i32 : i32
  }
  func.func @transform_1(%arg0: i32) -> (i32, i32) {
    %c0_i32 = arith.constant 0 : i32
    %c0_i32_0 = arith.constant 0 : i32
    return %arg0, %c0_i32 : i32, i32
  }
  func.func @transform_2(%arg0: i32) -> (i32, i32) {
    %c0_i32 = arith.constant 0 : i32
    %c0_i32_0 = arith.constant 0 : i32
    return %arg0, %c0_i32 : i32, i32
  }
}

</mosaic_0001>

<bundles_post_ra>
// kernel: tpu_custom_call.1
= control target key start
LH: loop header
LB: loop body
LE: loop exit
PB: predicated region body
PF: predicated region fallthrough
CT: control target
= control target key end

     0   :  { %s554_s0 = inlined_call_operand.<no memory space> [shape: f32[1], index: 0, kind: input, shape index: {}]   ;;  %s555_s1 = inlined_call_operand.hbm [shape: f32[16,128], index: 1, kind: input, shape index: {}]   ;;  %s556_s2 = inlined_call_operand.hbm [shape: f32[16,128], index: 2, kind: output, shape index: {}]  }
   0x1   :  { %7 = sst [smem:[#allocation2]] %s554_s0 }
   0x2   :  { %8 = vsyncpa [#allocation4], 0 }
   0x3   :  { %10 = vsyncpa [#allocation4 + $0x1], 0 }
   0x4   :  { %11 = vsyncpa [#allocation5], 0 }
   0x5   :  { %13 = vsyncpa [#allocation5 + $0x1], 0  ;;  %s427_s11 = smov 0   ;;  %s429_s12 = smov 0  }
   0x6   :  { %s431_s13 = smov 0   ;;  %s433_s14 = smov 0  }
   0x7 LB: > { %s448_s0 = sadd.s32 4294967295, %s407_s14   ;;  %s253_s15 = sadd.s32 4294967294, %s407_s14   ;;  %s407_s14 = sphi %s433_s14, %s566_s14   ;;  %s403_s13 = sphi %s431_s13, %s565_s13   ;;  %s399_s12 = sphi %s429_s12, %s564_s12   ;;  %s395_s11 = sphi %s427_s11, %s563_s11  }
   0x8   : > { %s452_s16 = sadd.s32 1, %s407_s14   ;;  %s47_s17 = sadd.s32 1, %s403_s13 }
   0x9   : > { %s44_s18 = ssub.s32 %s407_s14, %s452_s16  ;;  %p54_p0 = scmp.ne.s32.totalorder %s403_s13, %s399_s12 }
   0xa   : > { %p45_p1 = scmp.eq.s32.totalorder %s44_s18, 0  ;;  %p55_p2 = scmp.eq.s32.totalorder %s407_s14, 0 }
   0xb   : > { %p60_p3 = scmp.ne.s32.totalorder %s399_s12, %s395_s11  ;;  %p61_p4 = scmp.eq.s32.totalorder %s448_s0, 0 }
   0xc   : > { %s464_s19 = scalar_select %p45_p1, %s403_s13, %s47_s17  }
   0xd   : > { %p466_p5 = por %p55_p2, %p54_p0  ;;  %p470_p6 = por %p61_p4, %p60_p3 }
   0xe   : > { %p84_p7 = scmp.eq.s32.totalorder %s448_s0, 1  ;;  %p90_p8 = scmp.eq.s32.totalorder %s253_s15, 1 }
   0xf   : > { %p277_p10 = scmp.lt.s32.totalorder %s407_s14, 2  ;;  %s113_s24 = sand.u32 1, %s403_s13  }
  0x10   : > { %p477_p11 = por %p84_p7, %p54_p0  ;;  %p481_p12 = por %p90_p8, %p60_p3 }
  0x11   : > { %s257_s25 = sshll.u32 %s407_s14, 3  ;;  %s256_s26 = sshll.u32 %s113_s24, 3 }
  0x12   : > { %s121_s29 = scalar_lea.hbm %s555_s1, %s257_s25  ;;  %s117_s3 = scalar_lea.vmem [#allocation3], %s256_s26 }
  0x13   : > { %s123_s30 = sshll.u32 %s121_s29, 4  ;;  %s125_s4 = sshll.u32 %s117_s3, 4  ;;  %s124_s30 = int_to_ptr.hbm [resolvable:$true] %s123_s30  ;;  %s126_s4 = int_to_ptr.vmem [resolvable:$true] %s125_s4 }
  0x14   : > { %p492_p13 = pnand %p277_p10, %p466_p5  ;;  %p258_p0 = scmp.ge.s32.totalorder %s407_s14, 1 }
  0x15   : > { %p130_p1 = scmp.lt.s32.totalorder %s407_s14, 3  ;;  %s114_s6 = scalar_lea.sflag [#allocation4], %s113_s24 }
  0x16   : > { %s311_s7 = sshra.s32 %s124_s30, 4  ;;  %p315_p3 = pneg %p492_p13  ;;  %s312_s7 = int_to_ptr.hbm [resolvable:$true] %s311_s7 }
  0x17   : > { %s313_s8 = scalar_lea.hbm %s312_s7, 8  ;;  %s318_s15 = scalar_lea.hbm %s555_s1, 16 }
  0x18   : > { %p314_p2 = scmp.ne.s32.totalorder %s312_s7, %s313_s8  ;;  %p319_p5 = scmp.lt.s32.totalorder %s312_s7, %s555_s1 }
  0x19   : > { %p320_p8 = scmp.lt.s32.totalorder %s318_s15, %s313_s8 }
  0x1a   : > { %p316_p4 = pnand %p315_p3, %p314_p2 }
  0x1b   : > { %p321_p10 = por %p320_p8, %p319_p5 }
  0x1c   : > { %p317_p7 = pneg %p316_p4 }
  0x1e   : > { %p322_p9 = pnand %p321_p10, %p317_p7 }
  0x20   : > { %325 = shalt.err (!%p322_p9)
}
  0x21   : > { %272 = dma.hbm_to_vmem [thread:$0]  (!%p492_p13), %s124_s30, 128, %s126_s4, %s114_s6  }
  0x22   : > { %p131_p2 = pnand %p258_p0, %p130_p1 }
  0x23   : > { %s513_s20 = sand.u32 (!%p131_p2), 1, %s399_s12  }
  0x24   : > { %134 = sbr.rel (%p131_p2) target bundleno = 57 (0x39), region = 28  ;;  %s259_s24 = sshll.u32 (!%p131_p2), %s513_s20, 3 }
  0x25   : > { %s137_s25 = scalar_lea.sflag (!%p131_p2), [#allocation4], %s513_s20  ;;  %s140_s26 = scalar_lea.vmem (!%p131_p2), [#allocation3], %s259_s24 }
  0x29   : > { %386 = dma.done.wait (%p470_p6), %s137_s25, 128  }
  0x2a   : > { %388 = vsyncadd (%p470_p6), %s137_s25, 4294967168  ;;  %s162_s27 = sld [smem:[#allocation2]]  ;;  %s262_s28 = sshll.u32 %s448_s0, 3  ;;  %v163_v0 = vld [vmem:[%s140_s26] sm:$0xff] }
  0x2b   : > { %s178_s3 = scalar_lea.hbm %s556_s2, %s262_s28  ;;  %s161_s4 = scalar_lea.vmem [#allocation6], %s259_s24 }
  0x2c   : > { %s180_s5 = sshll.u32 %s161_s4, 4  ;;  %s182_s6 = sshll.u32 %s178_s3, 4  ;;  %s181_s5 = int_to_ptr.vmem [resolvable:$true] %s180_s5  ;;  %s183_s6 = int_to_ptr.hbm [resolvable:$true] %s182_s6 }
  0x2d   : > { %s168_s21 = scalar_lea.sflag [#allocation5], %s513_s20  ;;  %s355_s7 = sshra.s32 %s183_s6, 4  ;;  %s356_s7 = int_to_ptr.hbm [resolvable:$true] %s355_s7 }
  0x2e   : > { %s357_s8 = scalar_lea.hbm %s356_s7, 8  ;;  %s361_s10 = scalar_lea.hbm %s556_s2, 16 }
  0x2f   : > { %p358_p6 = scmp.ne.s32.totalorder %s356_s7, %s357_s8  ;;  %p362_p0 = scmp.lt.s32.totalorder %s356_s7, %s556_s2 }
  0x30   : > { %v164_v1 = vstv %s162_s27  ;;  %p363_p1 = scmp.lt.s32.totalorder %s361_s10, %s357_s8 }
  0x31   : > { %v165_v2 = vmul.f32 %v164_v1, %v163_v0  ;;  %p359_p9 = pnand %p358_p6, %p477_p11 }
  0x32   : > { %p364_p3 = por %p363_p1, %p362_p0 }
  0x33   : > { %166 = vst [vmem:[%s161_s4] sm:$0xff] %v165_v2  ;;  %p360_p13 = pneg %p359_p9 }
  0x35   : > { %p365_p4 = pnand %p364_p3, %p360_p13 }
  0x37   : > { %368 = shalt.err (!%p365_p4)
}
  0x38   : > { %267 = dma.vmem_to_hbm [thread:$0]  (%p477_p11), %s181_s5, 128, %s183_s6, %s168_s21  }
  0x39 PF: > { %s194_s18 = sand.u32 1, %s395_s11   ;;  %p562_p7 = scmp.ge.s32.totalorder %s407_s14, 2 }
  0x3a   : > { %s195_s20 = scalar_lea.sflag [#allocation5], %s194_s18 }
  0x3b   : > { %p274_p5 = pnand %p562_p7, %p481_p12 }
  0x3d   : > { %p275_p8 = pneg %p274_p5 }
  0x3f   : > { %390 = dma.done.wait (%p275_p8), %s195_s20, 128  }
  0x40   : > { %392 = vsyncadd (%p275_p8), %s195_s20, 4294967168  ;;  %p16_p10 = scmp.ge.s32.totalorder %s452_s16, 4   ;;  %s563_s11 = smov %s399_s12 }
  0x41   : > { %s564_s12 = smov %s403_s13  ;;  %s565_s13 = smov %s464_s19 }
  0x42   : > { %s566_s14 = smov %s452_s16  ;;  %18 = sbr.rel (!%p16_p10) target bundleno = 7 (0x7), region = 73 }
  0x47   :  { %201 = vsyncpa [#allocation4], 1 }
  0x48   :  { %203 = vsyncpa [#allocation4 + $0x1], 1 }
  0x49   :  { %204 = vsyncpa [#allocation5], 1 }
  0x4a   :  { %206 = vsyncpa [#allocation5 + $0x1], 1 }

</bundles_post_ra>
